<compile_context>
chip_gen: v5e
topology: v5e:2x2
jax: 0.10.0
libtpu: 0.0.40
codegen_flags: <defaults>
</compile_context>

<pallas_src>
import math
import jax
import jax.numpy as jnp
from jax.experimental import pallas as pl
from jax.experimental.pallas import tpu as pltpu

EPS = 1e-5   # nn.LayerNorm default eps
_LANE = 128


def _round_up(n, m):
    return ((n + m - 1) // m) * m


def actor_kernel(x_ref,
                 w1_ref, b1_ref, g1_ref, be1_ref, m1_ref,      # feature_net (+ avg matrix)
                 wh1_ref, bh1_ref, gh_ref, beh_ref, mh_ref,    # fused head layer 1 (+ block avg)
                 wh2_ref, bh2_ref,                             # fused head layer 2 (lane padded)
                 out_ref):
    # ---- feature_net: Linear -> LayerNorm -> ReLU -> Dropout(eval: identity) ----
    x = x_ref[...]
    h = jnp.dot(x, w1_ref[...], preferred_element_type=jnp.float32) + b1_ref[...]
    # LayerNorm stats on the MXU: m1 = ones(H,H)/H broadcasts the row mean to
    # every lane, so no XLU cross-lane reduce is needed.
    mu = jnp.dot(h, m1_ref[...], preferred_element_type=jnp.float32)
    hc = h - mu
    var = jnp.dot(hc * hc, m1_ref[...], preferred_element_type=jnp.float32)
    h = hc * jax.lax.rsqrt(var + EPS) * g1_ref[...] + be1_ref[...]
    h = jnp.maximum(h, 0.0)
    # TODO(synk): training=True Dropout(p=0.1) path not implemented (eval semantics).

    # ---- three heads fused: one wide Linear -> per-segment LayerNorm -> ReLU ----
    z = jnp.dot(h, wh1_ref[...], preferred_element_type=jnp.float32) + bh1_ref[...]
    # mh = block-diag(ones(h2,h2)/h2): per-head segment mean/var, lane dense,
    # no slicing / concatenation.
    mu2 = jnp.dot(z, mh_ref[...], preferred_element_type=jnp.float32)
    zc = z - mu2
    var2 = jnp.dot(zc * zc, mh_ref[...], preferred_element_type=jnp.float32)
    zn = zc * jax.lax.rsqrt(var2 + EPS) * gh_ref[...] + beh_ref[...]
    zn = jnp.maximum(zn, 0.0)

    # ---- fused second Linears (block-diag, 128-lane padded) -> Tanh, one store ----
    a = jnp.dot(zn, wh2_ref[...], preferred_element_type=jnp.float32) + bh2_ref[...]
    out_ref[...] = jnp.tanh(a)


def _fuse_head_params(wh1, bh1, gh, beh, wh2, bh2, out_pad):
    """Concatenate head-1 params along the output axis; build a block-diagonal,
    lane-padded head-2 weight so the head stage is two lane-dense matmuls."""
    h2 = wh1.shape[2]
    a3 = wh2.shape[2]
    wh1_cat = jnp.concatenate([wh1[i] for i in range(3)], axis=-1)     # (H, 3*h2)
    bh1_cat = jnp.concatenate([bh1[i] for i in range(3)], axis=-1)     # (1, 3*h2)
    gh_cat = jnp.concatenate([gh[i] for i in range(3)], axis=-1)       # (1, 3*h2)
    beh_cat = jnp.concatenate([beh[i] for i in range(3)], axis=-1)     # (1, 3*h2)
    zero = jnp.zeros((h2, a3), jnp.float32)
    wh2_blk = jnp.concatenate([
        jnp.concatenate([wh2[0], zero,   zero], axis=-1),
        jnp.concatenate([zero,   wh2[1], zero], axis=-1),
        jnp.concatenate([zero,   zero,   wh2[2]], axis=-1),
    ], axis=0)                                                         # (3*h2, 3*a3)
    bh2_cat = jnp.concatenate([bh2[i] for i in range(3)], axis=-1)     # (1, 3*a3)
    # Lane-dense output: zero-pad output columns to a multiple of 128 so the
    # kernel stores full vregs (no masked vst.msk partial stores).
    pad = out_pad - 3 * a3
    wh2_blk = jnp.pad(wh2_blk, ((0, 0), (0, pad)))                     # (3*h2, out_pad)
    bh2_cat = jnp.pad(bh2_cat, ((0, 0), (0, pad)))                     # (1, out_pad)
    return wh1_cat, bh1_cat, gh_cat, beh_cat, wh2_blk, bh2_cat


def _avg_matrices(hidden_dim):
    """Averaging matrices so LayerNorm mean/var run on the (otherwise idle) MXU."""
    h2 = hidden_dim // 2
    m1 = jnp.full((hidden_dim, hidden_dim), 1.0 / hidden_dim, jnp.float32)
    mh = jnp.kron(jnp.eye(3, dtype=jnp.float32),
                  jnp.full((h2, h2), 1.0 / h2, jnp.float32))           # (3*h2, 3*h2)
    return m1, mh


def _choose_tile(B):
    Bp8 = _round_up(B, 8)
    if Bp8 <= 1024:
        return Bp8     # single block: kernel is step-overhead bound at these sizes
    # >= 2 grid steps so the "parallel" axis shards across v7x's two TensorCores
    # (one extra ~0.35 us step is noise on single-TC v5e/v6e); cap at 4096 rows
    # so live f32 intermediates stay a few MiB (safe on v7x's 64 MiB VMEM).
    return min(_round_up(-(-Bp8 // 2), 8), 4096)


def actor_forward(x, params, *, tb=None):
    (w1, b1, g1, be1, wh1, bh1, gh, beh, wh2, bh2) = params
    B, S = x.shape
    H = w1.shape[1]
    a3 = wh2.shape[-1]
    action_dim = 3 * a3
    out_pad = _round_up(action_dim, _LANE)
    assert w1.shape[0] == S, "state_dim mismatch with w1"
    assert wh1.shape[0] == 3 and wh2.shape[0] == 3, "expected 3 stacked heads"

    wh1_cat, bh1_cat, gh_cat, beh_cat, wh2_blk, bh2_cat = _fuse_head_params(
        wh1, bh1, gh, beh, wh2, bh2, out_pad)
    m1, mh = _avg_matrices(H)

    if tb is None:
        tb = _choose_tile(B)
    tb = _round_up(tb, 8)
    Bp = _round_up(B, tb)
    xp = jnp.pad(x, ((0, Bp - B), (0, 0))) if Bp != B else x
    grid = (Bp // tb,)

    def full(arr):
        return pl.BlockSpec(arr.shape, lambda i, _nd=arr.ndim: (0,) * _nd)

    out = pl.pallas_call(
        actor_kernel,
        out_shape=jax.ShapeDtypeStruct((Bp, out_pad), jnp.float32),
        grid_spec=pltpu.PrefetchScalarGridSpec(
            num_scalar_prefetch=0,
            grid=grid,
            in_specs=[
                pl.BlockSpec((tb, S), lambda i: (i, 0)),     # state tile
                full(w1), full(b1), full(g1), full(be1), full(m1),
                full(wh1_cat), full(bh1_cat), full(gh_cat), full(beh_cat), full(mh),
                full(wh2_blk), full(bh2_cat),
            ],
            out_specs=pl.BlockSpec((tb, out_pad), lambda i: (i, 0)),
        ),
        compiler_params=pltpu.CompilerParams(dimension_semantics=("parallel",)),
    )(xp, w1, b1, g1, be1, m1,
      wh1_cat, bh1_cat, gh_cat, beh_cat, mh,
      wh2_blk, bh2_cat)

    return out[:B, :action_dim]


def init_params(key, state_dim, action_dim, hidden_dim):
    """Deterministic init: orthogonal(gain=sqrt(2)) weights, zero biases,
    LayerNorm gamma=1 / beta=0.  Weights stored as (in, out)."""
    h2 = hidden_dim // 2
    a3 = action_dim // 3
    ortho = jax.nn.initializers.orthogonal(scale=math.sqrt(2.0))
    keys = jax.random.split(key, 7)

    w1 = ortho(keys[0], (state_dim, hidden_dim), jnp.float32)
    b1 = jnp.zeros((1, hidden_dim), jnp.float32)
    g1 = jnp.ones((1, hidden_dim), jnp.float32)
    be1 = jnp.zeros((1, hidden_dim), jnp.float32)

    # stacked head params: index 0=voltage, 1=active_power, 2=reactive_power
    wh1 = jnp.stack([ortho(keys[1 + i], (hidden_dim, h2), jnp.float32) for i in range(3)])
    bh1 = jnp.zeros((3, 1, h2), jnp.float32)
    gh = jnp.ones((3, 1, h2), jnp.float32)
    beh = jnp.zeros((3, 1, h2), jnp.float32)
    wh2 = jnp.stack([ortho(keys[4 + i], (h2, a3), jnp.float32) for i in range(3)])
    bh2 = jnp.zeros((3, 1, a3), jnp.float32)

    return (w1, b1, g1, be1, wh1, bh1, gh, beh, wh2, bh2)


def _layernorm(x, gamma, beta):
    mu = jnp.mean(x, axis=-1, keepdims=True)
    xc = x - mu
    var = jnp.mean(xc * xc, axis=-1, keepdims=True)
    return xc * jax.lax.rsqrt(var + EPS) * gamma + beta


def actor_forward_ref(x, params):
    """Pure-JAX reference (per-head, unfused) for correctness checking."""
    (w1, b1, g1, be1, wh1, bh1, gh, beh, wh2, bh2) = params
    h = jnp.maximum(_layernorm(x @ w1 + b1, g1, be1), 0.0)
    outs = []
    for i in range(3):
        z = jnp.maximum(_layernorm(h @ wh1[i] + bh1[i], gh[i], beh[i]), 0.0)
        outs.append(jnp.tanh(z @ wh2[i] + bh2[i]))
    return jnp.concatenate(outs, axis=-1)


if __name__ == "__main__":
    state_dim, action_dim, hidden_dim = 16, 6, 32
    batch = 16

    key = jax.random.PRNGKey(0)
    k_x, k_p = jax.random.split(key)
    x = jax.random.normal(k_x, (batch, state_dim), jnp.float32)
    params = init_params(k_p, state_dim, action_dim, hidden_dim)

    out = jax.block_until_ready(actor_forward(x, params))
    ref = actor_forward_ref(x, params)
    assert out.shape == (batch, action_dim)
    assert jnp.all(jnp.isfinite(out))
    assert jnp.allclose(out, ref, atol=1e-4, rtol=1e-4)

    # Non-divisible / multi-tile path (padding + grid > 1).
    x2 = jax.random.normal(jax.random.PRNGKey(3), (37, state_dim), jnp.float32)
    out2 = jax.block_until_ready(actor_forward(x2, params, tb=16))
    assert out2.shape == (37, action_dim)
    assert jnp.allclose(out2, actor_forward_ref(x2, params), atol=1e-4, rtol=1e-4)

    # Default tile heuristic with B > 1024 (exercises the >=2-step grid used to
    # shard across v7x's two TensorCores).
    x3 = jax.random.normal(jax.random.PRNGKey(7), (1056, state_dim), jnp.float32)
    out3 = jax.block_until_ready(actor_forward(x3, params))
    assert out3.shape == (1056, action_dim)
    assert jnp.allclose(out3, actor_forward_ref(x3, params), atol=1e-4, rtol=1e-4)

    print("KERNEL_OK")
</pallas_src>

<mosaic_0001>
module attributes {stable_mosaic.version = 11 : i64} {
  func.func @actor_kernel(%arg0: i32, %arg1: memref<16x16xf32, #tpu.memory_space<vmem>>, %arg2: memref<16x32xf32, #tpu.memory_space<vmem>>, %arg3: memref<1x32xf32, #tpu.memory_space<vmem>>, %arg4: memref<1x32xf32, #tpu.memory_space<vmem>>, %arg5: memref<1x32xf32, #tpu.memory_space<vmem>>, %arg6: memref<32x32xf32, #tpu.memory_space<vmem>>, %arg7: memref<32x48xf32, #tpu.memory_space<vmem>>, %arg8: memref<1x48xf32, #tpu.memory_space<vmem>>, %arg9: memref<1x48xf32, #tpu.memory_space<vmem>>, %arg10: memref<1x48xf32, #tpu.memory_space<vmem>>, %arg11: memref<48x48xf32, #tpu.memory_space<vmem>>, %arg12: memref<48x128xf32, #tpu.memory_space<vmem>>, %arg13: memref<1x128xf32, #tpu.memory_space<vmem>>, %arg14: memref<16x128xf32, #tpu.memory_space<vmem>>) attributes {dimension_semantics = [#tpu.dimension_semantics<parallel>], iteration_bounds = array<i64: 1>, scalar_prefetch = 0 : i64, scratch_operands = 0 : i64, tpu.core_type = #tpu.core_type<tc>, window_params = [{transform_indices = @transform_0, window_bounds = array<i64: 16, 16>}, {pipeline_mode = #tpu.pipeline_mode<synchronous>, transform_indices = @transform_1, window_bounds = array<i64: 16, 32>}, {pipeline_mode = #tpu.pipeline_mode<synchronous>, transform_indices = @transform_2, window_bounds = array<i64: 1, 32>}, {pipeline_mode = #tpu.pipeline_mode<synchronous>, transform_indices = @transform_3, window_bounds = array<i64: 1, 32>}, {pipeline_mode = #tpu.pipeline_mode<synchronous>, transform_indices = @transform_4, window_bounds = array<i64: 1, 32>}, {pipeline_mode = #tpu.pipeline_mode<synchronous>, transform_indices = @transform_5, window_bounds = array<i64: 32, 32>}, {pipeline_mode = #tpu.pipeline_mode<synchronous>, transform_indices = @transform_6, window_bounds = array<i64: 32, 48>}, {pipeline_mode = #tpu.pipeline_mode<synchronous>, transform_indices = @transform_7, window_bounds = array<i64: 1, 48>}, {pipeline_mode = #tpu.pipeline_mode<synchronous>, transform_indices = @transform_8, window_bounds = array<i64: 1, 48>}, {pipeline_mode = #tpu.pipeline_mode<synchronous>, transform_indices = @transform_9, window_bounds = array<i64: 1, 48>}, {pipeline_mode = #tpu.pipeline_mode<synchronous>, transform_indices = @transform_10, window_bounds = array<i64: 48, 48>}, {pipeline_mode = #tpu.pipeline_mode<synchronous>, transform_indices = @transform_11, window_bounds = array<i64: 48, 128>}, {pipeline_mode = #tpu.pipeline_mode<synchronous>, transform_indices = @transform_12, window_bounds = array<i64: 1, 128>}, {transform_indices = @transform_13, window_bounds = array<i64: 16, 128>}]} {
    %c0 = arith.constant 0 : index
    %c0_0 = arith.constant 0 : index
    %0 = vector.load %arg1[%c0, %c0_0] : memref<16x16xf32, #tpu.memory_space<vmem>>, vector<16x16xf32>
    %c0_1 = arith.constant 0 : index
    %c0_2 = arith.constant 0 : index
    %1 = vector.load %arg2[%c0_1, %c0_2] : memref<16x32xf32, #tpu.memory_space<vmem>>, vector<16x32xf32>
    %cst = arith.constant dense<0.000000e+00> : vector<16x32xf32>
    %2 = tpu.matmul %0, %1, %cst {dimension_numbers = #tpu.dot_dimension_numbers<[1], [0], [0], [1], [0, 0, 1, 1], [], []>} : vector<16x16xf32>, vector<16x32xf32>, vector<16x32xf32> -> vector<16x32xf32>
    %c0_3 = arith.constant 0 : index
    %c0_4 = arith.constant 0 : index
    %3 = vector.load %arg3[%c0_3, %c0_4] : memref<1x32xf32, #tpu.memory_space<vmem>>, vector<1x32xf32>
    %4 = vector.broadcast %3 : vector<1x32xf32> to vector<16x32xf32>
    %5 = arith.addf %2, %4 : vector<16x32xf32>
    %c0_5 = arith.constant 0 : index
    %c0_6 = arith.constant 0 : index
    %6 = vector.load %arg6[%c0_5, %c0_6] : memref<32x32xf32, #tpu.memory_space<vmem>>, vector<32x32xf32>
    %cst_7 = arith.constant dense<0.000000e+00> : vector<16x32xf32>
    %7 = tpu.matmul %5, %6, %cst_7 {dimension_numbers = #tpu.dot_dimension_numbers<[1], [0], [0], [1], [0, 0, 1, 1], [], []>} : vector<16x32xf32>, vector<32x32xf32>, vector<16x32xf32> -> vector<16x32xf32>
    %8 = arith.subf %5, %7 : vector<16x32xf32>
    %9 = arith.mulf %8, %8 : vector<16x32xf32>
    %c0_8 = arith.constant 0 : index
    %c0_9 = arith.constant 0 : index
    %10 = vector.load %arg6[%c0_8, %c0_9] : memref<32x32xf32, #tpu.memory_space<vmem>>, vector<32x32xf32>
    %cst_10 = arith.constant dense<0.000000e+00> : vector<16x32xf32>
    %11 = tpu.matmul %9, %10, %cst_10 {dimension_numbers = #tpu.dot_dimension_numbers<[1], [0], [0], [1], [0, 0, 1, 1], [], []>} : vector<16x32xf32>, vector<32x32xf32>, vector<16x32xf32> -> vector<16x32xf32>
    %cst_11 = arith.constant 9.99999974E-6 : f32
    %12 = vector.broadcast %cst_11 : f32 to vector<16x32xf32>
    %13 = arith.addf %11, %12 : vector<16x32xf32>
    %14 = math.rsqrt %13 : vector<16x32xf32>
    %15 = arith.mulf %8, %14 : vector<16x32xf32>
    %c0_12 = arith.constant 0 : index
    %c0_13 = arith.constant 0 : index
    %16 = vector.load %arg4[%c0_12, %c0_13] : memref<1x32xf32, #tpu.memory_space<vmem>>, vector<1x32xf32>
    %17 = vector.broadcast %16 : vector<1x32xf32> to vector<16x32xf32>
    %18 = arith.mulf %15, %17 : vector<16x32xf32>
    %c0_14 = arith.constant 0 : index
    %c0_15 = arith.constant 0 : index
    %19 = vector.load %arg5[%c0_14, %c0_15] : memref<1x32xf32, #tpu.memory_space<vmem>>, vector<1x32xf32>
    %20 = vector.broadcast %19 : vector<1x32xf32> to vector<16x32xf32>
    %21 = arith.addf %18, %20 : vector<16x32xf32>
    %cst_16 = arith.constant 0.000000e+00 : f32
    %22 = vector.broadcast %cst_16 : f32 to vector<16x32xf32>
    %23 = arith.maximumf %21, %22 : vector<16x32xf32>
    %c0_17 = arith.constant 0 : index
    %c0_18 = arith.constant 0 : index
    %24 = vector.load %arg7[%c0_17, %c0_18] : memref<32x48xf32, #tpu.memory_space<vmem>>, vector<32x48xf32>
    %cst_19 = arith.constant dense<0.000000e+00> : vector<16x48xf32>
    %25 = tpu.matmul %23, %24, %cst_19 {dimension_numbers = #tpu.dot_dimension_numbers<[1], [0], [0], [1], [0, 0, 1, 1], [], []>} : vector<16x32xf32>, vector<32x48xf32>, vector<16x48xf32> -> vector<16x48xf32>
    %c0_20 = arith.constant 0 : index
    %c0_21 = arith.constant 0 : index
    %26 = vector.load %arg8[%c0_20, %c0_21] : memref<1x48xf32, #tpu.memory_space<vmem>>, vector<1x48xf32>
    %27 = vector.broadcast %26 : vector<1x48xf32> to vector<16x48xf32>
    %28 = arith.addf %25, %27 : vector<16x48xf32>
    %c0_22 = arith.constant 0 : index
    %c0_23 = arith.constant 0 : index
    %29 = vector.load %arg11[%c0_22, %c0_23] : memref<48x48xf32, #tpu.memory_space<vmem>>, vector<48x48xf32>
    %cst_24 = arith.constant dense<0.000000e+00> : vector<16x48xf32>
    %30 = tpu.matmul %28, %29, %cst_24 {dimension_numbers = #tpu.dot_dimension_numbers<[1], [0], [0], [1], [0, 0, 1, 1], [], []>} : vector<16x48xf32>, vector<48x48xf32>, vector<16x48xf32> -> vector<16x48xf32>
    %31 = arith.subf %28, %30 : vector<16x48xf32>
    %32 = arith.mulf %31, %31 : vector<16x48xf32>
    %c0_25 = arith.constant 0 : index
    %c0_26 = arith.constant 0 : index
    %33 = vector.load %arg11[%c0_25, %c0_26] : memref<48x48xf32, #tpu.memory_space<vmem>>, vector<48x48xf32>
    %cst_27 = arith.constant dense<0.000000e+00> : vector<16x48xf32>
    %34 = tpu.matmul %32, %33, %cst_27 {dimension_numbers = #tpu.dot_dimension_numbers<[1], [0], [0], [1], [0, 0, 1, 1], [], []>} : vector<16x48xf32>, vector<48x48xf32>, vector<16x48xf32> -> vector<16x48xf32>
    %cst_28 = arith.constant 9.99999974E-6 : f32
    %35 = vector.broadcast %cst_28 : f32 to vector<16x48xf32>
    %36 = arith.addf %34, %35 : vector<16x48xf32>
    %37 = math.rsqrt %36 : vector<16x48xf32>
    %38 = arith.mulf %31, %37 : vector<16x48xf32>
    %c0_29 = arith.constant 0 : index
    %c0_30 = arith.constant 0 : index
    %39 = vector.load %arg9[%c0_29, %c0_30] : memref<1x48xf32, #tpu.memory_space<vmem>>, vector<1x48xf32>
    %40 = vector.broadcast %39 : vector<1x48xf32> to vector<16x48xf32>
    %41 = arith.mulf %38, %40 : vector<16x48xf32>
    %c0_31 = arith.constant 0 : index
    %c0_32 = arith.constant 0 : index
    %42 = vector.load %arg10[%c0_31, %c0_32] : memref<1x48xf32, #tpu.memory_space<vmem>>, vector<1x48xf32>
    %43 = vector.broadcast %42 : vector<1x48xf32> to vector<16x48xf32>
    %44 = arith.addf %41, %43 : vector<16x48xf32>
    %cst_33 = arith.constant 0.000000e+00 : f32
    %45 = vector.broadcast %cst_33 : f32 to vector<16x48xf32>
    %46 = arith.maximumf %44, %45 : vector<16x48xf32>
    %c0_34 = arith.constant 0 : index
    %c0_35 = arith.constant 0 : index
    %47 = vector.load %arg12[%c0_34, %c0_35] : memref<48x128xf32, #tpu.memory_space<vmem>>, vector<48x128xf32>
    %cst_36 = arith.constant dense<0.000000e+00> : vector<16x128xf32>
    %48 = tpu.matmul %46, %47, %cst_36 {dimension_numbers = #tpu.dot_dimension_numbers<[1], [0], [0], [1], [0, 0, 1, 1], [], []>} : vector<16x48xf32>, vector<48x128xf32>, vector<16x128xf32> -> vector<16x128xf32>
    %c0_37 = arith.constant 0 : index
    %c0_38 = arith.constant 0 : index
    %49 = vector.load %arg13[%c0_37, %c0_38] : memref<1x128xf32, #tpu.memory_space<vmem>>, vector<1x128xf32>
    %50 = vector.broadcast %49 : vector<1x128xf32> to vector<16x128xf32>
    %51 = arith.addf %48, %50 : vector<16x128xf32>
    %52 = math.tanh %51 : vector<16x128xf32>
    %c0_39 = arith.constant 0 : index
    %c0_40 = arith.constant 0 : index
    %53 = vector.load %arg14[%c0_39, %c0_40] : memref<16x128xf32, #tpu.memory_space<vmem>>, vector<16x128xf32>
    tpu.vector_store %arg14[%c0_39, %c0_40], %52 {strides = array<i32>} : memref<16x128xf32, #tpu.memory_space<vmem>>, vector<16x128xf32>,
    return
  }
  func.func @transform_0(%arg0: i32) -> (i32, i32) {
    %c0_i32 = arith.constant 0 : i32
    %c0_i32_0 = arith.constant 0 : i32
    return %arg0, %c0_i32 : i32, i32
  }
  func.func @transform_1(%arg0: i32) -> (i32, i32) {
    %c0_i32 = arith.constant 0 : i32
    %c0_i32_0 = arith.constant 0 : i32
    %c0_i32_1 = arith.constant 0 : i32
    return %c0_i32, %c0_i32_0 : i32, i32
  }
  func.func @transform_2(%arg0: i32) -> (i32, i32) {
    %c0_i32 = arith.constant 0 : i32
    %c0_i32_0 = arith.constant 0 : i32
    %c0_i32_1 = arith.constant 0 : i32
    return %c0_i32, %c0_i32_0 : i32, i32
  }
  func.func @transform_3(%arg0: i32) -> (i32, i32) {
    %c0_i32 = arith.constant 0 : i32
    %c0_i32_0 = arith.constant 0 : i32
    %c0_i32_1 = arith.constant 0 : i32
    return %c0_i32, %c0_i32_0 : i32, i32
  }
  func.func @transform_4(%arg0: i32) -> (i32, i32) {
    %c0_i32 = arith.constant 0 : i32
    %c0_i32_0 = arith.constant 0 : i32
    %c0_i32_1 = arith.constant 0 : i32
    return %c0_i32, %c0_i32_0 : i32, i32
  }
  func.func @transform_5(%arg0: i32) -> (i32, i32) {
    %c0_i32 = arith.constant 0 : i32
    %c0_i32_0 = arith.constant 0 : i32
    %c0_i32_1 = arith.constant 0 : i32
    return %c0_i32, %c0_i32_0 : i32, i32
  }
  func.func @transform_6(%arg0: i32) -> (i32, i32) {
    %c0_i32 = arith.constant 0 : i32
    %c0_i32_0 = arith.constant 0 : i32
    %c0_i32_1 = arith.constant 0 : i32
    return %c0_i32, %c0_i32_0 : i32, i32
  }
  func.func @transform_7(%arg0: i32) -> (i32, i32) {
    %c0_i32 = arith.constant 0 : i32
    %c0_i32_0 = arith.constant 0 : i32
    %c0_i32_1 = arith.constant 0 : i32
    return %c0_i32, %c0_i32_0 : i32, i32
  }
  func.func @transform_8(%arg0: i32) -> (i32, i32) {
    %c0_i32 = arith.constant 0 : i32
    %c0_i32_0 = arith.constant 0 : i32
    %c0_i32_1 = arith.constant 0 : i32
    return %c0_i32, %c0_i32_0 : i32, i32
  }
  func.func @transform_9(%arg0: i32) -> (i32, i32) {
    %c0_i32 = arith.constant 0 : i32
    %c0_i32_0 = arith.constant 0 : i32
    %c0_i32_1 = arith.constant 0 : i32
    return %c0_i32, %c0_i32_0 : i32, i32
  }
  func.func @transform_10(%arg0: i32) -> (i32, i32) {
    %c0_i32 = arith.constant 0 : i32
    %c0_i32_0 = arith.constant 0 : i32
    %c0_i32_1 = arith.constant 0 : i32
    return %c0_i32, %c0_i32_0 : i32, i32
  }
  func.func @transform_11(%arg0: i32) -> (i32, i32) {
    %c0_i32 = arith.constant 0 : i32
    %c0_i32_0 = arith.constant 0 : i32
    %c0_i32_1 = arith.constant 0 : i32
    return %c0_i32, %c0_i32_0 : i32, i32
  }
  func.func @transform_12(%arg0: i32) -> (i32, i32) {
    %c0_i32 = arith.constant 0 : i32
    %c0_i32_0 = arith.constant 0 : i32
    %c0_i32_1 = arith.constant 0 : i32
    return %c0_i32, %c0_i32_0 : i32, i32
  }
  func.func @transform_13(%arg0: i32) -> (i32, i32) {
    %c0_i32 = arith.constant 0 : i32
    %c0_i32_0 = arith.constant 0 : i32
    return %arg0, %c0_i32 : i32, i32
  }
}

</mosaic_0001>

<bundles_post_ra>
// kernel: tpu_custom_call.1
= control target key start
LH: loop header
LB: loop body
LE: loop exit
PB: predicated region body
PF: predicated region fallthrough
CT: control target
= control target key end

     0   :  { %18 = vsyncpa [#allocation3], 0  ;;  %s872_s0 = inlined_call_operand.hbm [shape: f32[16,16], index: 0, kind: input, shape index: {}]   ;;  %s873_s1 = inlined_call_operand.hbm [shape: f32[16,32], index: 1, kind: input, shape index: {}]   ;;  %s874_s2 = inlined_call_operand.vmem [shape: f32[1,32], index: 2, kind: input, shape index: {}]   ;;  %s875_s3 = inlined_call_operand.vmem [shape: f32[1,32], index: 3, kind: input, shape index: {}]   ;;  %s876_s4 = inlined_call_operand.vmem [shape: f32[1,32], index: 4, kind: input, shape index: {}]   ;;  %s877_s5 = inlined_call_operand.hbm [shape: f32[32,32], index: 5, kind: input, shape index: {}]   ;;  %s878_s6 = inlined_call_operand.hbm [shape: f32[32,48], index: 6, kind: input, shape index: {}]   ;;  %s879_s7 = inlined_call_operand.vmem [shape: f32[1,48], index: 7, kind: input, shape index: {}]   ;;  %s880_s8 = inlined_call_operand.vmem [shape: f32[1,48], index: 8, kind: input, shape index: {}]   ;;  %s881_s9 = inlined_call_operand.vmem [shape: f32[1,48], index: 9, kind: input, shape index: {}]   ;;  %s882_s10 = inlined_call_operand.hbm [shape: f32[48,48], index: 10, kind: input, shape index: {}]   ;;  %s883_s11 = inlined_call_operand.hbm [shape: f32[48,128], index: 11, kind: input, shape index: {}]   ;;  %s884_s12 = inlined_call_operand.vmem [shape: f32[1,128], index: 12, kind: input, shape index: {}]   ;;  %s885_s13 = inlined_call_operand.hbm [shape: f32[16,128], index: 13, kind: output, shape index: {}]  }
   0x1   :  { %19 = vsyncpa [#allocation6], 0 }
   0x2   :  { %20 = vsyncpa [#allocation9], 0 }
   0x3   :  { %21 = vsyncpa [#allocation12], 0 }
   0x4   :  { %22 = vsyncpa [#allocation4], 0  ;;  %s40_s27 = sshll.u32 %s873_s1, 4  ;;  %s713_s28 = smov [#allocation5]   ;;  %s41_s27 = int_to_ptr.hbm [resolvable:$true] %s40_s27 }
   0x5   :  { %s42_s29 = sshll.u32 %s713_s28, 4  ;;  %s72_s15 = sshll.u32 %s878_s6, 4  ;;  %s43_s29 = int_to_ptr.vmem [resolvable:$true] %s42_s29  ;;  %s73_s15 = int_to_ptr.hbm [resolvable:$true] %s72_s15 }
   0x6   :  { %s714_s16 = smov 128   ;;  %s715_s17 = smov 8  }
   0x7   :  { %48 = dma.hbm_to_vmem [thread:$0]  %s41_s27, 256, %s43_s29, [#allocation6], %s714_s16, %s714_s16, %s715_s17  }
   0x8   :  { %s716_s18 = smov [#allocation8]   ;;  %s27_s1 = sshll.u32 %s872_s0, 4  ;;  %s28_s1 = int_to_ptr.hbm [resolvable:$true] %s27_s1 }
   0x9   :  { %s74_s19 = sshll.u32 %s716_s18, 4  ;;  %s59_s23 = sshll.u32 %s877_s5, 4  ;;  %s75_s19 = int_to_ptr.vmem [resolvable:$true] %s74_s19  ;;  %s60_s23 = int_to_ptr.hbm [resolvable:$true] %s59_s23 }
   0xa   :  { %80 = dma.hbm_to_vmem [thread:$0]  %s73_s15, 512, %s75_s19, [#allocation9], %s714_s16, %s714_s16, %s715_s17  }
   0xb   :  { %s717_s24 = smov [#allocation2]   ;;  %s718_s26 = smov [#allocation7]  }
   0xc   :  { %s29_s25 = sshll.u32 %s717_s24, 4  ;;  %s61_s0 = sshll.u32 %s718_s26, 4  ;;  %s30_s25 = int_to_ptr.vmem [resolvable:$true] %s29_s25  ;;  %s62_s0 = int_to_ptr.vmem [resolvable:$true] %s61_s0 }
   0xd   :  { %35 = dma.hbm_to_vmem [thread:$0]  %s28_s1, 256, %s30_s25, [#allocation3], %s714_s16, %s714_s16, %s715_s17  }
   0xe   :  { %s91_s29 = sshll.u32 %s882_s10, 4  ;;  %s104_s14 = sshll.u32 %s883_s11, 4  ;;  %s92_s29 = int_to_ptr.hbm [resolvable:$true] %s91_s29  ;;  %s105_s14 = int_to_ptr.hbm [resolvable:$true] %s104_s14 }
   0xf   :  { %67 = dma.hbm_to_vmem [thread:$0]  %s60_s23, 512, %s62_s0, [#allocation6], %s714_s16, %s714_s16, %s715_s17  }
  0x10   :  { %s719_s15 = smov [#allocation10]   ;;  %s720_s19 = smov [#allocation11]  }
  0x11   :  { %s93_s18 = sshll.u32 %s719_s15, 4  ;;  %s106_s10 = sshll.u32 %s720_s19, 4  ;;  %s94_s18 = int_to_ptr.vmem [resolvable:$true] %s93_s18  ;;  %s107_s10 = int_to_ptr.vmem [resolvable:$true] %s106_s10 }
  0x12   :  { %99 = dma.hbm_to_vmem [thread:$0]  %s92_s29, 768, %s94_s18, [#allocation9], %s714_s16, %s714_s16, %s715_s17  }
  0x13   :  { %112 = dma.hbm_to_vmem [thread:$0]  %s105_s14, 768, %s107_s10, [#allocation12], %s714_s16, %s714_s16, %s715_s17  }
  0x14   :  { %703 = dma.done.wait [#allocation3], 256  }
  0x15   :  { %704 = vsyncadd [#allocation3], 4294967040 }
  0x16   :  { %705 = dma.done.wait [#allocation6], 768  }
  0x17   :  { %706 = vsyncadd [#allocation6], 4294966528 }
  0x18   :  { %707 = dma.done.wait [#allocation9], 1280  }
  0x19   :  { %708 = vsyncadd [#allocation9], 4294966016 }
  0x1a   :  { %709 = dma.done.wait [#allocation12], 768  }
  0x1b   :  { %710 = vsyncadd [#allocation12], 4294966528  ;;  %v142_v0 = vld [vmem:[#allocation5 + $0x8] sm:$0xff]  ;;  %v141_v1 = vld [vmem:[#allocation5] sm:$0xff]  ;;  %vm147_vm0 = vcmask 130048   ;;  %vm181_vm1 = vcmask 261120  }
  0x1c   :  { %168 = vmatpush.msra.mxu0 %v142_v0  ;;  %v139_v2 = vld [vmem:[#allocation2] sm:$0xff]  ;;  %v180_v3 = vld [vmem:[#allocation7 + $0x18] sm:$0xff]  ;;  %v179_v4 = vld [vmem:[#allocation7 + $0x10] sm:$0xff]  ;;  %vm323_vm8 = vcmask 392192   ;;  %s721_s25 = smov [#allocation13]   ;;  %s471_s28 = sshll.u32 %s885_s13, 4  ;;  %s472_s28 = int_to_ptr.hbm [resolvable:$true] %s471_s28 }
  0x1d   :  { %200 = vmatpush.msra.mxu1 %v180_v3  ;;  %233 = vmatpush.msra.mxu2 %v180_v3  ;;  %v140_v5 = vld [vmem:[#allocation2 + $0x8] sm:$0xff]  ;;  %v177_v7 = vld [vmem:[#allocation7] sm:$0xff]  ;;  %v283_v19 = vld [vmem:[#allocation8 + $0x18] sm:$0xff]  ;;  %s469_s26 = sshll.u32 %s721_s25, 4  ;;  %s470_s26 = int_to_ptr.vmem [resolvable:$true] %s469_s26 }
  0x1e   :  { %169 = vmatpush.msra.mxu0 %v141_v1  ;;  %v178_v6 = vld [vmem:[#allocation7 + $0x8] sm:$0xff]  ;;  %v516_v8 = vld [vmem:[%s874_s2] ss:$0 sm:$0xff]  ;;  %306 = vmatpush.msra.mxu3 %v283_v19  ;;  %v282_v20 = vld [vmem:[#allocation8 + $0x10] sm:$0xff] }
  0x1f   :  { %487 = vmatmul.msk.f32.vlgmr.msra.gmra.mxu0 %vm147_vm0, %v139_v2  ;;  %201 = vmatpush.msra.mxu1 %v179_v4  ;;  %v281_v21 = vld [vmem:[#allocation8 + $0x8] sm:$0xff]  ;;  %v280_v22 = vld [vmem:[#allocation8] sm:$0xff]  ;;  %v320_v27 = vld [vmem:[#allocation10 + $0x18] sm:$0xff] }
  0x20   :  { %234 = vmatpush.msra.mxu2 %v179_v4  ;;  %307 = vmatpush.msra.mxu3 %v282_v20  ;;  %v322_v25 = vld [vmem:[#allocation10 + $0x28] sm:$0xff]  ;;  %v321_v26 = vld [vmem:[#allocation10 + $0x20] sm:$0xff]  ;;  %v319_v31 = vld [vmem:[#allocation10 + $0x10] sm:$0xff] }
  0x21   :  { %202 = vmatpush.msra.mxu1 %v178_v6  ;;  %340 = vmatpush.msrb.mxu0 %v322_v25  ;;  %v318_v33 = vld [vmem:[#allocation10 + $0x8] sm:$0xff]  ;;  %v517_v40 = vld [vmem:[%s875_s3] ss:$0 sm:$0xff]  ;;  %v427_v4 = vld [vmem:[#allocation11 + $0x28] sm:$0xff] }
  0x22   :  { %235 = vmatpush.msra.mxu2 %v178_v6  ;;  %308 = vmatpush.msra.mxu3 %v281_v21  ;;  %v518_v44 = vld [vmem:[%s876_s4] ss:$0 sm:$0xff]  ;;  %v425_v6 = vld [vmem:[#allocation11 + $0x18] sm:$0xff] }
  0x23   :  { %203 = vmatpush.msra.mxu1 %v177_v7  ;;  %341 = vmatpush.msrb.mxu0 %v321_v26  ;;  %v317_v56 = vld [vmem:[#allocation10] sm:$0xff] }
  0x24   :  { %236 = vmatpush.msra.mxu2 %v177_v7  ;;  %309 = vmatpush.msra.mxu3 %v280_v22  ;;  %v519_v57 = vld [vmem:[%s879_s7] ss:$0 sm:$0xff] }
  0x25   :  { %373 = vmatpush.msrb.mxu1 %v322_v25  ;;  %342 = vmatpush.msrb.mxu0 %v320_v27  ;;  %v424_v7 = vld [vmem:[#allocation11 + $0x10] sm:$0xff] }
  0x26   :  { %501 = vmatpush.msrb.mxu3 %v322_v25  ;;  %448 = vmatpush.msrb.mxu2 %v427_v4  ;;  %v520_v20 = vld [vmem:[%s880_s8] ss:$0 sm:$0xff] }
  0x27   :  { %488 = vmatmul.msk.f32.gmra.mxu0 %vm147_vm0, %v140_v5  ;;  %374 = vmatpush.msrb.mxu1 %v321_v26  ;;  %v426_v5 = vld [vmem:[#allocation11 + $0x20] sm:$0xff] }
  0x28   :  { %502 = vmatpush.msrb.mxu3 %v321_v26  ;;  %343 = vmatpush.msrb.mxu0 %v319_v31 }
  0x29   :  { %375 = vmatpush.msrb.mxu1 %v320_v27  ;;  %449 = vmatpush.msrb.mxu2 %v426_v5 }
  0x2a   :  { %503 = vmatpush.msrb.mxu3 %v320_v27  ;;  %344 = vmatpush.msrb.mxu0 %v318_v33 }
  0x2b   :  { %376 = vmatpush.msrb.mxu1 %v319_v31  ;;  %450 = vmatpush.msrb.mxu2 %v425_v6 }
  0x2c   :  { %504 = vmatpush.msrb.mxu3 %v319_v31  ;;  %345 = vmatpush.msrb.mxu0 %v317_v56 }
  0x2d   :  { %377 = vmatpush.msrb.mxu1 %v318_v33  ;;  %451 = vmatpush.msrb.mxu2 %v424_v7 }
  0x2e   :  { %505 = vmatpush.msrb.mxu3 %v318_v33 }
  0x2f   :  { %378 = vmatpush.msrb.mxu1 %v317_v56 }
  0x30   :  { %506 = vmatpush.msrb.mxu3 %v317_v56 }
  0x9c   :  { %v171_v9 = vpop.f32.mrf.mxu0 }
  0x9d   :  { %v172_v10 = vadd.f32 %v516_v8, %v171_v9  ;;  %v422_v9 = vld [vmem:[#allocation11] sm:$0xff] }
  0x9f   :  { %489 = vmatmul.msk.f32.vlgmr.msra.gmra.mxu1 %vm181_vm1, %v172_v10 }
  0xa4   :  { %v174_v11 = vpop.f32.mrf.mxu0 }
  0xa5   :  { %v175_v12 = vadd.f32 %v516_v8, %v174_v11  ;;  %v423_v8 = vld [vmem:[#allocation11 + $0x8] sm:$0xff] }
  0xa6   :  { %452 = vmatpush.msrb.mxu2 %v423_v8 }
  0xa7   :  { %490 = vmatmul.msk.f32.gmra.mxu1 %vm181_vm1, %v175_v12 }
  0xa8   :  { %453 = vmatpush.msrb.mxu2 %v422_v9 }
 0x11c   :  { %v205_v13 = vpop.f32.mrf.mxu1 }
 0x11d   :  { %v211_v14 = vsub.f32 %v172_v10, %v205_v13 }
 0x11f   :  { %v213_v15 = vmul.f32 %v211_v14, %v211_v14 }
 0x121   :  { %491 = vmatmul.msk.f32.vlgmr.msra.gmra.mxu2 %vm181_vm1, %v213_v15 }
 0x124   :  { %v208_v16 = vpop.f32.mrf.mxu1 }
 0x125   :  { %v834_v17 = vsub.f32 %v175_v12, %v208_v16 }
 0x127   :  { %v214_v18 = vmul.f32 %v834_v17, %v834_v17 }
 0x129   :  { %492 = vmatmul.msk.f32.gmra.mxu2 %vm181_vm1, %v214_v18 }
 0x1a4   :  { %v238_v23 = vpop.f32.mrf.mxu2 }
 0x1a5   :  { %v239_v24 = vadd.f32 1e-05, %v238_v23  ;;  %v521_v23 = vld [vmem:[%s881_s9] ss:$0 sm:$0xff] }
 0x1a7   :  { %523 = vrsqrt.f32 %v239_v24  ;;  %vm250_vm3 = vweird.f32 %v239_v24 }
 0x1ac   :  { %v241_v28 = vpop.f32.mrf.mxu2 }
 0x1ad   :  { %v524_v29 = vpop.eup %523  ;;  %v242_v30 = vadd.f32 1e-05, %v241_v28 }
 0x1ae   :  { %v245_v32 = vmul.f32 %v524_v29, %v239_v24  ;;  %vm251_vm2 = vweird.f32 %v524_v29 }
 0x1af   :  { %525 = vrsqrt.f32 %v242_v30  ;;  %vm252_vm4 = vmor %vm250_vm3, %vm251_vm2  ;;  %vm260_vm6 = vweird.f32 %v242_v30 }
 0x1b0   :  { %v246_v34 = vmul.f32 %v524_v29, %v245_v32 }
 0x1b2   :  { %v247_v35 = vmul.f32 0.5, %v246_v34 }
 0x1b4   :  { %v248_v36 = vsub.f32 1.5, %v247_v35 }
 0x1b5   :  { %v526_v37 = vpop.eup %525 }
 0x1b6   :  { %v249_v38 = vmul.f32 %v524_v29, %v248_v36  ;;  %v255_v39 = vmul.f32 %v526_v37, %v242_v30  ;;  %vm261_vm5 = vweird.f32 %v526_v37 }
 0x1b7   :  { %vm262_vm7 = vmor %vm260_vm6, %vm261_vm5 }
 0x1b8   :  { %v253_v41 = vsel %vm252_vm4, %v524_v29, %v249_v38  ;;  %v256_v42 = vmul.f32 %v526_v37, %v255_v39  ;;  %v522_v38 = vld [vmem:[%s884_s12] ss:$0 sm:$0xff] }
 0x1b9   :  { %v264_v43 = vmul.f32 %v253_v41, %v211_v14 }
 0x1ba   :  { %v257_v45 = vmul.f32 0.5, %v256_v42 }
 0x1bb   :  { %v270_v46 = vmul.f32 %v517_v40, %v264_v43 }
 0x1bc   :  { %v258_v47 = vsub.f32 1.5, %v257_v45 }
 0x1bd   :  { %v276_v48 = vadd.f32 %v518_v44, %v270_v46 }
 0x1be   :  { %v259_v49 = vmul.f32 %v526_v37, %v258_v47 }
 0x1bf   :  { %v278_v50 = vmax.f32 %v276_v48, 0.0 }
 0x1c0   :  { %v263_v51 = vsel %vm262_vm7, %v526_v37, %v259_v49 }
 0x1c1   :  { %493 = vmatmul.msk.f32.vlgmr.msra.gmra.mxu3 %vm181_vm1, %v278_v50  ;;  %v265_v52 = vmul.f32 %v263_v51, %v834_v17 }
 0x1c3   :  { %v271_v53 = vmul.f32 %v517_v40, %v265_v52 }
 0x1c5   :  { %v277_v54 = vadd.f32 %v518_v44, %v271_v53 }
 0x1c7   :  { %v279_v55 = vmax.f32 %v277_v54, 0.0 }
 0x1c9   :  { %494 = vmatmul.msk.f32.gmra.mxu3 %vm181_vm1, %v279_v55 }
 0x244   :  { %v311_v58 = vpop.f32.mrf.mxu3 }
 0x245   :  { %v312_v59 = vadd.f32 %v519_v57, %v311_v58 }
 0x247   :  { %495 = vmatmul.msk.f32.vlgmr.msrb.gmra.mxu0 %vm323_vm8, %v312_v59 }
 0x24c   :  { %v314_v60 = vpop.f32.mrf.mxu3 }
 0x24d   :  { %v315_v61 = vadd.f32 %v519_v57, %v314_v60 }
 0x24f   :  { %496 = vmatmul.msk.f32.gmra.mxu0 %vm323_vm8, %v315_v61 }
 0x2c4   :  { %v347_v62 = vpop.f32.mrf.mxu0 }
 0x2c5   :  { %v353_v63 = vsub.f32 %v312_v59, %v347_v62 }
 0x2c7   :  { %v355_v0 = vmul.f32 %v353_v63, %v353_v63 }
 0x2c9   :  { %497 = vmatmul.msk.f32.vlgmr.msrb.gmra.mxu1 %vm323_vm8, %v355_v0 }
 0x2cc   :  { %v350_v1 = vpop.f32.mrf.mxu0 }
 0x2cd   :  { %v354_v2 = vsub.f32 %v315_v61, %v350_v1 }
 0x2cf   :  { %v356_v3 = vmul.f32 %v354_v2, %v354_v2 }
 0x2d1   :  { %498 = vmatmul.msk.f32.vlgmr.msrb.gmra.mxu3 %vm323_vm8, %v356_v3 }
 0x346   :  { %v380_v10 = vpop.f32.mrf.mxu1 }
 0x347   :  { %v381_v11 = vadd.f32 1e-05, %v380_v10 }
 0x349   :  { %527 = vrsqrt.f32 %v381_v11  ;;  %vm392_vm10 = vweird.f32 %v381_v11 }
 0x34f   :  { %v528_v12 = vpop.eup %527 }
 0x350   :  { %v387_v13 = vmul.f32 %v528_v12, %v381_v11  ;;  %vm393_vm9 = vweird.f32 %v528_v12 }
 0x351   :  { %vm394_vm11 = vmor %vm392_vm10, %vm393_vm9 }
 0x352   :  { %v388_v14 = vmul.f32 %v528_v12, %v387_v13 }
 0x354   :  { %v389_v15 = vmul.f32 0.5, %v388_v14  ;;  %v383_v16 = vpop.f32.mrf.mxu3 }
 0x355   :  { %v384_v17 = vadd.f32 1e-05, %v383_v16 }
 0x356   :  { %v390_v18 = vsub.f32 1.5, %v389_v15 }
 0x357   :  { %529 = vrsqrt.f32 %v384_v17  ;;  %vm402_vm13 = vweird.f32 %v384_v17 }
 0x358   :  { %v391_v19 = vmul.f32 %v528_v12, %v390_v18 }
 0x35a   :  { %v395_v21 = vsel %vm394_vm11, %v528_v12, %v391_v19 }
 0x35b   :  { %v406_v22 = vmul.f32 %v395_v21, %v353_v63 }
 0x35d   :  { %v530_v24 = vpop.eup %529  ;;  %v412_v25 = vmul.f32 %v520_v20, %v406_v22 }
 0x35e   :  { %v397_v26 = vmul.f32 %v530_v24, %v384_v17  ;;  %vm403_vm12 = vweird.f32 %v530_v24 }
 0x35f   :  { %v418_v27 = vadd.f32 %v521_v23, %v412_v25  ;;  %vm404_vm14 = vmor %vm402_vm13, %vm403_vm12 }
 0x360   :  { %v398_v28 = vmul.f32 %v530_v24, %v397_v26 }
 0x361   :  { %v420_v29 = vmax.f32 %v418_v27, 0.0 }
 0x362   :  { %v399_v30 = vmul.f32 0.5, %v398_v28 }
 0x363   :  { %499 = vmatmul.msk.f32.vlgmr.msrb.gmra.mxu2 %vm323_vm8, %v420_v29 }
 0x364   :  { %v400_v31 = vsub.f32 1.5, %v399_v30 }
 0x366   :  { %v401_v32 = vmul.f32 %v530_v24, %v400_v31 }
 0x368   :  { %v405_v33 = vsel %vm404_vm14, %v530_v24, %v401_v32 }
 0x369   :  { %v407_v34 = vmul.f32 %v405_v33, %v354_v2 }
 0x36b   :  { %v413_v35 = vmul.f32 %v520_v20, %v407_v34 }
 0x36d   :  { %v419_v36 = vadd.f32 %v521_v23, %v413_v35 }
 0x36f   :  { %v421_v37 = vmax.f32 %v419_v36, 0.0 }
 0x371   :  { %500 = vmatmul.msk.f32.gmra.mxu2 %vm323_vm8, %v421_v37 }
 0x3e6   :  { %v455_v39 = vpop.f32.mrf.mxu2 }
 0x3e7   :  { %v456_v40 = vadd.f32 %v522_v38, %v455_v39 }
 0x3e9   :  { %531 = vtanh.f32 %v456_v40 }
 0x3ef   :  { %v532_v41 = vpop.eup %531 }
 0x3f0   :  { %463 = vst [vmem:[#allocation13] sm:$0xff] %v532_v41 }
 0x3f4   :  { %v458_v42 = vpop.f32.mrf.mxu2 }
 0x3f5   :  { %v459_v43 = vadd.f32 %v522_v38, %v458_v42 }
 0x3f7   :  { %533 = vtanh.f32 %v459_v43 }
 0x3fd   :  { %v534_v44 = vpop.eup %533 }
 0x3fe   :  { %464 = vst [vmem:[#allocation13 + $0x8] sm:$0xff] %v534_v44 }
 0x3ff   :  { %477 = dma.vmem_to_hbm [thread:$0]  %s470_s26, 256, %s472_s28, [#allocation4], %s714_s16, %s714_s16, %s715_s17  }
 0x400   :  { %711 = dma.done.wait [#allocation4], 256  }
 0x401   :  { %712 = vsyncadd [#allocation4], 4294967040 }
 0x402   :  { %482 = vsyncpa [#allocation3], 1 }
 0x403   :  { %483 = vsyncpa [#allocation6], 1 }
 0x404   :  { %484 = vsyncpa [#allocation9], 1 }
 0x405   :  { %485 = vsyncpa [#allocation12], 1 }
 0x406   :  { %486 = vsyncpa [#allocation4], 1 }

</bundles_post_ra>
